<compile_context>
chip_gen: v6e
topology: v6e:2x2x1
jax: 0.10.0
libtpu: 0.0.40
codegen_flags: <defaults>
</compile_context>

<pallas_src>
import jax
import jax.numpy as jnp
from jax.experimental import pallas as pl
from jax.experimental.pallas import tpu as pltpu


def _gp_kernel(alpha_ref, real_ref, fake_ref, w1_ref, w1t_ref, b1_ref, w2_ref,
               out_ref, h_acc, dh_scr, ss_acc):
    phase = pl.program_id(1)          # 0: forward h accumulation, 1: backward norm
    k = pl.program_id(2)              # F-tile index (reduction axis, last in grid)
    kt = pl.num_programs(2)

    # ---------------- phase 0: forward hidden pre-activation ----------------
    @pl.when(phase == 0)
    def _forward():
        @pl.when(k == 0)
        def _():
            h_acc[...] = jnp.zeros_like(h_acc)

        r = real_ref[...]                                        # (bn, bf) stream dtype
        f = fake_ref[...]
        alpha = alpha_ref[...].astype(r.dtype)                   # (bn, 1)
        # fake + alpha * (real - fake) == alpha*real + (1-alpha)*fake, one mul fewer.
        # Arithmetic stays in the streamed dtype (bf16-native VALUs on v6e/v7x).
        x = f + alpha * (r - f)
        h_acc[...] += jnp.dot(x, w1_ref[...],
                              preferred_element_type=jnp.float32)  # (bn, H) f32

    # -------- phase 1: analytic input-gradient, per-sample L2 norm ----------
    @pl.when(phase == 1)
    def _backward():
        @pl.when(k == 0)
        def _prep():
            ss_acc[...] = jnp.zeros_like(ss_acc)
            # Hoisted: computed exactly once per batch tile (not per F-tile).
            h = h_acc[...] + b1_ref[...]                         # (bn, H) f32
            # LeakyReLU'(h): slope 0.2 for h <= 0 (PyTorch/JAX subgradient convention).
            dact = jnp.where(h > 0.0, jnp.float32(1.0), jnp.float32(0.2))
            dh_scr[...] = (dact * w2_ref[...]).astype(dh_scr.dtype)

        # Natural-layout MXU matmul against the pre-transposed weights.
        grad = jnp.dot(dh_scr[...], w1t_ref[...],
                       preferred_element_type=jnp.float32)       # (bn, bf) f32
        g2 = grad * grad
        bf = g2.shape[1]
        nseg, rem = divmod(bf, 128)
        # Lane-dense accumulation: pure VPU adds per F-tile; the single
        # cross-lane (XLU) reduce happens only in the finalize below.
        for s in range(nseg):
            ss_acc[...] += g2[:, s * 128:(s + 1) * 128]
        if rem:
            ss_acc[:, 0:1] += jnp.sum(g2[:, nseg * 128:], axis=1, keepdims=True)

        @pl.when(k == kt - 1)
        def _finalize():
            ss = jnp.sum(ss_acc[...], axis=1, keepdims=True)     # (bn, 1)
            out_ref[...] = (jnp.sqrt(ss) - jnp.float32(1.0)) ** 2


def _pick_block_n(N):
    """MXU-row-aligned batch tile, capped at 256; prefer >=2 tiles when possible
    (so v7x's two TensorCores both get work at the cost of one extra weight pass)."""
    if N <= 256:
        half = N // 2
        if half >= 8 and N % 2 == 0 and half % 8 == 0:
            return half
        return N
    for cand in (256, 128, 64, 32, 16, 8):
        if N % cand == 0:
            return cand
    return N


def _pick_block_f(F, H, block_n, itemsize, vmem_budget):
    """Largest lane-aligned F tile whose double-buffered streams fit the VMEM budget."""
    candidates = [c for c in (1024, 512, 256, 128) if F % c == 0]
    candidates.append(F)
    for bf in candidates:
        streams = 2 * (2 * block_n * bf + 2 * bf * H) * itemsize     # real/fake/W1/W1T, x2 buffers
        scratch = block_n * H * 4 + block_n * H * itemsize + block_n * 128 * 4
        if streams + scratch <= vmem_budget:
            return bf
    return candidates[-1]


def gradient_penalty_loss(alpha, real_flat, fake_flat, w1, b1, w2, *,
                          w1t=None, block_n=None, block_f=None,
                          stream_dtype=jnp.bfloat16,
                          vmem_limit_bytes=48 << 20):
    """WGAN-GP gradient penalty.

    alpha:(N,1) f32   real_flat/fake_flat:(N,F)   w1:(F,H)   b1:(1,H)   w2:(1,H)
    w1t: optional pre-transposed W1 (H,F) — pass a persistent copy per training
         step to avoid a full HBM read+write transpose inside every loss call.
    stream_dtype: dtype for the large streamed operands real/fake/W1/W1T
         (default bf16; halves HBM bytes, bf16 MXU rate); accumulation stays f32.
    vmem_limit_bytes: keep <=48 MiB for v7x (64 MiB physical); raise to 64-96 MiB
         on v5e/v6e (128 MiB VMEM) for larger tiles.
    """
    N, F = real_flat.shape
    H = w1.shape[1]
    alpha = alpha.astype(jnp.float32).reshape(N, 1)
    b1 = b1.astype(jnp.float32).reshape(1, H)
    w2 = w2.astype(jnp.float32).reshape(1, H)

    # --- optional reduced-precision streaming of the dominant HBM streams ----
    if stream_dtype is not None:
        real_flat = real_flat.astype(stream_dtype)
        fake_flat = fake_flat.astype(stream_dtype)
        w1 = w1.astype(stream_dtype)
        if w1t is not None:
            w1t = w1t.astype(stream_dtype)
    if w1t is None:
        # TODO(synk): in a real training loop keep a persistently transposed copy.
        w1t = w1.T

    # --- tile sizes -----------------------------------------------------------
    if block_n is None:
        block_n = _pick_block_n(N)
    if block_f is None:
        block_f = _pick_block_f(F, H, block_n, real_flat.dtype.itemsize,
                                int(0.6 * vmem_limit_bytes))
    assert N % block_n == 0 and F % block_f == 0
    nt = N // block_n
    kt = F // block_f
    last_k = kt - 1

    # --- index maps: stream in the active phase, pin the last-fetched block
    #     in the inactive phase so no block is ever re-DMA'd. -------------------
    def rf_map(i, p, k):        # real / fake: stream in phase 0, pin in phase 1
        return (i, k * (1 - p) + last_k * p)

    def w1_map(i, p, k):        # W1: stream in phase 0, pin in phase 1
        return (k * (1 - p) + last_k * p, 0)

    def w1t_map(i, p, k):       # W1^T: pinned at tile 0 in phase 0, stream in phase 1
        return (0, k * p)

    def alpha_map(i, p, k):
        return (i, 0)

    def const_map(i, p, k):
        return (0, 0)

    def out_map(i, p, k):
        return (i, 0)

    per_sample = pl.pallas_call(
        _gp_kernel,
        out_shape=jax.ShapeDtypeStruct((N, 1), jnp.float32),
        grid_spec=pltpu.PrefetchScalarGridSpec(
            num_scalar_prefetch=0,
            grid=(nt, 2, kt),
            in_specs=[
                pl.BlockSpec((block_n, 1), alpha_map),        # alpha
                pl.BlockSpec((block_n, block_f), rf_map),     # real
                pl.BlockSpec((block_n, block_f), rf_map),     # fake
                pl.BlockSpec((block_f, H), w1_map),           # W1
                pl.BlockSpec((H, block_f), w1t_map),          # W1^T
                pl.BlockSpec((1, H), const_map),              # b1
                pl.BlockSpec((1, H), const_map),              # w2
            ],
            out_specs=pl.BlockSpec((block_n, 1), out_map),
            scratch_shapes=[
                pltpu.VMEM((block_n, H), jnp.float32),        # h accumulator (f32)
                pltpu.VMEM((block_n, H), w1.dtype),           # dh, stream dtype (hoisted)
                pltpu.VMEM((block_n, 128), jnp.float32),      # lane-dense sum(grad^2)
            ],
        ),
        compiler_params=pltpu.CompilerParams(
            # batch axis parallel (v7x 2 TCs), phase + F reduction sequential.
            dimension_semantics=("parallel", "arbitrary", "arbitrary"),
            vmem_limit_bytes=vmem_limit_bytes,
        ),
    )(alpha, real_flat, fake_flat, w1, w1t, b1, w2)

    # Per-sample (||grad||-1)^2 is computed in-kernel; the tiny mean over N is
    # done here so the batch axis can stay "parallel" across cores.
    return jnp.mean(per_sample)


def _reference(alpha, real_flat, fake_flat, w1, b1, w2):
    # Pure-JAX autodiff reference mirroring torch.autograd.grad semantics.
    def disc(x):
        h = x @ w1 + b1
        a = jnp.where(h > 0, h, 0.2 * h)
        return (a * w2).sum(axis=1, keepdims=True)   # (N, 1); output bias = 0

    x = fake_flat + alpha * (real_flat - fake_flat)
    grads = jax.grad(lambda xx: jnp.sum(disc(xx)))(x)   # grad_outputs = ones(N,1)
    norms = jnp.sqrt(jnp.sum(grads * grads, axis=1))
    return jnp.mean((norms - 1.0) ** 2)


if __name__ == "__main__":
    key = jax.random.PRNGKey(0)
    k_real, k_fake, k_alpha, k_w1, k_w2 = jax.random.split(key, 5)

    # Small shapes consistent with the module's NCHW conv-style inputs.
    N, C, Hh, Ww = 2, 4, 16, 16
    F = C * Hh * Ww            # 1024
    HID = 128                  # synthetic discriminator hidden width

    real = jax.random.normal(k_real, (N, C, Hh, Ww), dtype=jnp.float32)
    fake = jax.random.normal(k_fake, (N, C, Hh, Ww), dtype=jnp.float32)
    # torch.rand(N,1,1,1) broadcasting over C,H,W == (N,1) broadcasting over F.
    alpha = jax.random.uniform(k_alpha, (N, 1), dtype=jnp.float32)

    w1 = 0.02 * jax.random.normal(k_w1, (F, HID), dtype=jnp.float32)
    b1 = jnp.zeros((1, HID), dtype=jnp.float32)
    w2 = 0.02 * jax.random.normal(k_w2, (1, HID), dtype=jnp.float32)
    w1t = w1.T                 # persistent pre-transposed copy (once per step)

    real_flat = real.reshape(N, F)
    fake_flat = fake.reshape(N, F)

    ref = _reference(alpha, real_flat, fake_flat, w1, b1, w2)

    # f32 streams: tight check against the autodiff reference (block_f=256 ->
    # 4-step reduction over F, exercising the pipelined two-phase grid).
    loss_f32 = gradient_penalty_loss(alpha, real_flat, fake_flat, w1, b1, w2,
                                     w1t=w1t, block_f=256, stream_dtype=None)
    loss_f32 = jax.block_until_ready(loss_f32)
    assert jnp.allclose(loss_f32, ref, rtol=1e-4, atol=1e-4), (loss_f32, ref)

    # Default configuration: bf16 streamed operands (halves HBM bytes of the
    # dominant streams, bf16 MXU), auto-picked tiles; f32 accumulation, so only
    # a loose tolerance is needed.
    loss_bf16 = gradient_penalty_loss(alpha, real_flat, fake_flat, w1, b1, w2,
                                      w1t=w1t)
    loss_bf16 = jax.block_until_ready(loss_bf16)
    assert jnp.allclose(loss_bf16, ref, rtol=2e-2, atol=2e-2), (loss_bf16, ref)

    # bf16 with an explicit multi-step F reduction (exercises the streamed
    # phase-1 path with the hoisted dh scratch).
    loss_bf16_k = gradient_penalty_loss(alpha, real_flat, fake_flat, w1, b1, w2,
                                        w1t=w1t, block_f=256)
    loss_bf16_k = jax.block_until_ready(loss_bf16_k)
    assert jnp.allclose(loss_bf16_k, ref, rtol=2e-2, atol=2e-2), (loss_bf16_k, ref)

    print("KERNEL_OK")
</pallas_src>

<mosaic_0001>
module attributes {stable_mosaic.version = 11 : i64} {
  func.func @_gp_kernel(%arg0: i32, %arg1: i32, %arg2: i32, %arg3: memref<2x1xf32, #tpu.memory_space<vmem>>, %arg4: memref<2x256xf32, #tpu.memory_space<vmem>>, %arg5: memref<2x256xf32, #tpu.memory_space<vmem>>, %arg6: memref<256x128xf32, #tpu.memory_space<vmem>>, %arg7: memref<128x256xf32, #tpu.memory_space<vmem>>, %arg8: memref<1x128xf32, #tpu.memory_space<vmem>>, %arg9: memref<1x128xf32, #tpu.memory_space<vmem>>, %arg10: memref<2x1xf32, #tpu.memory_space<vmem>>, %arg11: memref<2x128xf32, #tpu.memory_space<vmem>>, %arg12: memref<2x128xf32, #tpu.memory_space<vmem>>, %arg13: memref<2x128xf32, #tpu.memory_space<vmem>>) attributes {dimension_semantics = [#tpu.dimension_semantics<parallel>, #tpu.dimension_semantics<arbitrary>, #tpu.dimension_semantics<arbitrary>], iteration_bounds = array<i64: 1, 2, 4>, scalar_prefetch = 0 : i64, scratch_operands = 3 : i64, tpu.core_type = #tpu.core_type<tc>, window_params = [{transform_indices = @transform_0, window_bounds = array<i64: 2, 1>}, {transform_indices = @transform_1, window_bounds = array<i64: 2, 256>}, {transform_indices = @transform_2, window_bounds = array<i64: 2, 256>}, {transform_indices = @transform_3, window_bounds = array<i64: 256, 128>}, {transform_indices = @transform_4, window_bounds = array<i64: 128, 256>}, {pipeline_mode = #tpu.pipeline_mode<synchronous>, transform_indices = @transform_5, window_bounds = array<i64: 1, 128>}, {pipeline_mode = #tpu.pipeline_mode<synchronous>, transform_indices = @transform_6, window_bounds = array<i64: 1, 128>}, {transform_indices = @transform_7, window_bounds = array<i64: 2, 1>}]} {
    %c0_i32 = arith.constant 0 : i32
    %0 = arith.cmpi eq, %arg1, %c0_i32 : i32
    %1 = arith.extui %0 : i1 to i32
    %c0_i32_0 = arith.constant 0 : i32
    %2 = arith.cmpi ne, %1, %c0_i32_0 : i32
    scf.if %2 {
      %c0_i32_2 = arith.constant 0 : i32
      %6 = arith.cmpi eq, %arg2, %c0_i32_2 : i32
      %7 = arith.extui %6 : i1 to i32
      %c0_i32_3 = arith.constant 0 : i32
      %8 = arith.cmpi ne, %7, %c0_i32_3 : i32
      scf.if %8 {
        %cst_15 = arith.constant 0.000000e+00 : f32
        %21 = vector.broadcast %cst_15 : f32 to vector<2x128xf32>
        %c0_16 = arith.constant 0 : index
        %c0_17 = arith.constant 0 : index
        %22 = vector.load %arg11[%c0_16, %c0_17] : memref<2x128xf32, #tpu.memory_space<vmem>>, vector<2x128xf32>
        tpu.vector_store %arg11[%c0_16, %c0_17], %21 {strides = array<i32>} : memref<2x128xf32, #tpu.memory_space<vmem>>, vector<2x128xf32>,
      } else {
      }
      %c0 = arith.constant 0 : index
      %c0_4 = arith.constant 0 : index
      %9 = vector.load %arg4[%c0, %c0_4] : memref<2x256xf32, #tpu.memory_space<vmem>>, vector<2x256xf32>
      %c0_5 = arith.constant 0 : index
      %c0_6 = arith.constant 0 : index
      %10 = vector.load %arg5[%c0_5, %c0_6] : memref<2x256xf32, #tpu.memory_space<vmem>>, vector<2x256xf32>
      %c0_7 = arith.constant 0 : index
      %c0_8 = arith.constant 0 : index
      %11 = vector.load %arg3[%c0_7, %c0_8] : memref<2x1xf32, #tpu.memory_space<vmem>>, vector<2x1xf32>
      %12 = arith.subf %9, %10 : vector<2x256xf32>
      %13 = vector.broadcast %11 : vector<2x1xf32> to vector<2x256xf32>
      %14 = arith.mulf %13, %12 : vector<2x256xf32>
      %15 = arith.addf %10, %14 : vector<2x256xf32>
      %c0_9 = arith.constant 0 : index
      %c0_10 = arith.constant 0 : index
      %16 = vector.load %arg11[%c0_9, %c0_10] : memref<2x128xf32, #tpu.memory_space<vmem>>, vector<2x128xf32>
      %c0_11 = arith.constant 0 : index
      %c0_12 = arith.constant 0 : index
      %17 = vector.load %arg6[%c0_11, %c0_12] : memref<256x128xf32, #tpu.memory_space<vmem>>, vector<256x128xf32>
      %cst = arith.constant dense<0.000000e+00> : vector<2x128xf32>
      %18 = tpu.matmul %15, %17, %cst {dimension_numbers = #tpu.dot_dimension_numbers<[1], [0], [0], [1], [0, 0, 1, 1], [], []>} : vector<2x256xf32>, vector<256x128xf32>, vector<2x128xf32> -> vector<2x128xf32>
      %19 = arith.addf %16, %18 : vector<2x128xf32>
      %c0_13 = arith.constant 0 : index
      %c0_14 = arith.constant 0 : index
      %20 = vector.load %arg11[%c0_13, %c0_14] : memref<2x128xf32, #tpu.memory_space<vmem>>, vector<2x128xf32>
      tpu.vector_store %arg11[%c0_13, %c0_14], %19 {strides = array<i32>} : memref<2x128xf32, #tpu.memory_space<vmem>>, vector<2x128xf32>,
    } else {
    }
    %c1_i32 = arith.constant 1 : i32
    %3 = arith.cmpi eq, %arg1, %c1_i32 : i32
    %4 = arith.extui %3 : i1 to i32
    %c0_i32_1 = arith.constant 0 : i32
    %5 = arith.cmpi ne, %4, %c0_i32_1 : i32
    scf.if %5 {
      %c0_i32_2 = arith.constant 0 : i32
      %6 = arith.cmpi eq, %arg2, %c0_i32_2 : i32
      %7 = arith.extui %6 : i1 to i32
      %c0_i32_3 = arith.constant 0 : i32
      %8 = arith.cmpi ne, %7, %c0_i32_3 : i32
      scf.if %8 {
        %cst_16 = arith.constant 0.000000e+00 : f32
        %24 = vector.broadcast %cst_16 : f32 to vector<2x128xf32>
        %c0_17 = arith.constant 0 : index
        %c0_18 = arith.constant 0 : index
        %25 = vector.load %arg13[%c0_17, %c0_18] : memref<2x128xf32, #tpu.memory_space<vmem>>, vector<2x128xf32>
        tpu.vector_store %arg13[%c0_17, %c0_18], %24 {strides = array<i32>} : memref<2x128xf32, #tpu.memory_space<vmem>>, vector<2x128xf32>,
        %c0_19 = arith.constant 0 : index
        %c0_20 = arith.constant 0 : index
        %26 = vector.load %arg11[%c0_19, %c0_20] : memref<2x128xf32, #tpu.memory_space<vmem>>, vector<2x128xf32>
        %c0_21 = arith.constant 0 : index
        %c0_22 = arith.constant 0 : index
        %27 = vector.load %arg8[%c0_21, %c0_22] : memref<1x128xf32, #tpu.memory_space<vmem>>, vector<1x128xf32>
        %28 = vector.broadcast %27 : vector<1x128xf32> to vector<2x128xf32>
        %29 = arith.addf %26, %28 : vector<2x128xf32>
        %cst_23 = arith.constant 0.000000e+00 : f32
        %30 = vector.broadcast %cst_23 : f32 to vector<2x128xf32>
        %31 = arith.cmpf ogt, %29, %30 : vector<2x128xf32>
        %cst_24 = arith.constant 1.000000e+00 : f32
        %cst_25 = arith.constant 2.000000e-01 : f32
        %32 = vector.broadcast %cst_24 : f32 to vector<2x128xf32>
        %33 = vector.broadcast %cst_25 : f32 to vector<2x128xf32>
        %34 = arith.select %31, %32, %33 : vector<2x128xi1>, vector<2x128xf32>
        %c0_26 = arith.constant 0 : index
        %c0_27 = arith.constant 0 : index
        %35 = vector.load %arg9[%c0_26, %c0_27] : memref<1x128xf32, #tpu.memory_space<vmem>>, vector<1x128xf32>
        %36 = vector.broadcast %35 : vector<1x128xf32> to vector<2x128xf32>
        %37 = arith.mulf %34, %36 : vector<2x128xf32>
        %c0_28 = arith.constant 0 : index
        %c0_29 = arith.constant 0 : index
        %38 = vector.load %arg12[%c0_28, %c0_29] : memref<2x128xf32, #tpu.memory_space<vmem>>, vector<2x128xf32>
        tpu.vector_store %arg12[%c0_28, %c0_29], %37 {strides = array<i32>} : memref<2x128xf32, #tpu.memory_space<vmem>>, vector<2x128xf32>,
      } else {
      }
      %c0 = arith.constant 0 : index
      %c0_4 = arith.constant 0 : index
      %9 = vector.load %arg12[%c0, %c0_4] : memref<2x128xf32, #tpu.memory_space<vmem>>, vector<2x128xf32>
      %c0_5 = arith.constant 0 : index
      %c0_6 = arith.constant 0 : index
      %10 = vector.load %arg7[%c0_5, %c0_6] : memref<128x256xf32, #tpu.memory_space<vmem>>, vector<128x256xf32>
      %cst = arith.constant dense<0.000000e+00> : vector<2x256xf32>
      %11 = tpu.matmul %9, %10, %cst {dimension_numbers = #tpu.dot_dimension_numbers<[1], [0], [0], [1], [0, 0, 1, 1], [], []>} : vector<2x128xf32>, vector<128x256xf32>, vector<2x256xf32> -> vector<2x256xf32>
      %12 = arith.mulf %11, %11 : vector<2x256xf32>
      %c0_7 = arith.constant 0 : index
      %c0_8 = arith.constant 0 : index
      %13 = vector.load %arg13[%c0_7, %c0_8] : memref<2x128xf32, #tpu.memory_space<vmem>>, vector<2x128xf32>
      %14 = vector.extract_strided_slice %12 {offsets = [0, 0], sizes = [2, 128], strides = [1, 1]} : vector<2x256xf32> to vector<2x128xf32>
      %15 = arith.addf %13, %14 : vector<2x128xf32>
      %c0_9 = arith.constant 0 : index
      %c0_10 = arith.constant 0 : index
      %16 = vector.load %arg13[%c0_9, %c0_10] : memref<2x128xf32, #tpu.memory_space<vmem>>, vector<2x128xf32>
      tpu.vector_store %arg13[%c0_9, %c0_10], %15 {strides = array<i32>} : memref<2x128xf32, #tpu.memory_space<vmem>>, vector<2x128xf32>,
      %c0_11 = arith.constant 0 : index
      %c0_12 = arith.constant 0 : index
      %17 = vector.load %arg13[%c0_11, %c0_12] : memref<2x128xf32, #tpu.memory_space<vmem>>, vector<2x128xf32>
      %18 = vector.extract_strided_slice %12 {offsets = [0, 128], sizes = [2, 128], strides = [1, 1]} : vector<2x256xf32> to vector<2x128xf32>
      %19 = arith.addf %17, %18 : vector<2x128xf32>
      %c0_13 = arith.constant 0 : index
      %c0_14 = arith.constant 0 : index
      %20 = vector.load %arg13[%c0_13, %c0_14] : memref<2x128xf32, #tpu.memory_space<vmem>>, vector<2x128xf32>
      tpu.vector_store %arg13[%c0_13, %c0_14], %19 {strides = array<i32>} : memref<2x128xf32, #tpu.memory_space<vmem>>, vector<2x128xf32>,
      %c3_i32 = arith.constant 3 : i32
      %21 = arith.cmpi eq, %arg2, %c3_i32 : i32
      %22 = arith.extui %21 : i1 to i32
      %c0_i32_15 = arith.constant 0 : i32
      %23 = arith.cmpi ne, %22, %c0_i32_15 : i32
      scf.if %23 {
        %c0_16 = arith.constant 0 : index
        %c0_17 = arith.constant 0 : index
        %24 = vector.load %arg13[%c0_16, %c0_17] : memref<2x128xf32, #tpu.memory_space<vmem>>, vector<2x128xf32>
        %cst_18 = arith.constant dense<0.000000e+00> : vector<2xf32>
        %25 = vector.multi_reduction <add>, %24, %cst_18 [1] : vector<2x128xf32> to vector<2xf32>
        %26 = vector.shape_cast %25 : vector<2xf32> to vector<2x1xf32>
        %27 = math.sqrt %26 : vector<2x1xf32>
        %cst_19 = arith.constant 1.000000e+00 : f32
        %28 = vector.broadcast %cst_19 : f32 to vector<2x1xf32>
        %29 = arith.subf %27, %28 : vector<2x1xf32>
        %30 = arith.mulf %29, %29 : vector<2x1xf32>
        %c0_20 = arith.constant 0 : index
        %c0_21 = arith.constant 0 : index
        %31 = vector.load %arg10[%c0_20, %c0_21] : memref<2x1xf32, #tpu.memory_space<vmem>>, vector<2x1xf32>
        tpu.vector_store %arg10[%c0_20, %c0_21], %30 {strides = array<i32>} : memref<2x1xf32, #tpu.memory_space<vmem>>, vector<2x1xf32>,
      } else {
      }
    } else {
    }
    return
  }
  func.func @transform_0(%arg0: i32, %arg1: i32, %arg2: i32) -> (i32, i32) {
    %c0_i32 = arith.constant 0 : i32
    %c0_i32_0 = arith.constant 0 : i32
    return %arg0, %c0_i32 : i32, i32
  }
  func.func @transform_1(%arg0: i32, %arg1: i32, %arg2: i32) -> (i32, i32) {
    %c1_i32 = arith.constant 1 : i32
    %0 = arith.subi %c1_i32, %arg1 : i32
    %1 = arith.muli %arg2, %0 : i32
    %c3_i32 = arith.constant 3 : i32
    %2 = arith.muli %c3_i32, %arg1 : i32
    %3 = arith.addi %1, %2 : i32
    %c0_i32 = arith.constant 0 : i32
    return %arg0, %3 : i32, i32
  }
  func.func @transform_2(%arg0: i32, %arg1: i32, %arg2: i32) -> (i32, i32) {
    %c1_i32 = arith.constant 1 : i32
    %0 = arith.subi %c1_i32, %arg1 : i32
    %1 = arith.muli %arg2, %0 : i32
    %c3_i32 = arith.constant 3 : i32
    %2 = arith.muli %c3_i32, %arg1 : i32
    %3 = arith.addi %1, %2 : i32
    %c0_i32 = arith.constant 0 : i32
    return %arg0, %3 : i32, i32
  }
  func.func @transform_3(%arg0: i32, %arg1: i32, %arg2: i32) -> (i32, i32) {
    %c1_i32 = arith.constant 1 : i32
    %0 = arith.subi %c1_i32, %arg1 : i32
    %1 = arith.muli %arg2, %0 : i32
    %c3_i32 = arith.constant 3 : i32
    %2 = arith.muli %c3_i32, %arg1 : i32
    %3 = arith.addi %1, %2 : i32
    %c0_i32 = arith.constant 0 : i32
    %c0_i32_0 = arith.constant 0 : i32
    return %3, %c0_i32 : i32, i32
  }
  func.func @transform_4(%arg0: i32, %arg1: i32, %arg2: i32) -> (i32, i32) {
    %0 = arith.muli %arg2, %arg1 : i32
    %c0_i32 = arith.constant 0 : i32
    %c0_i32_0 = arith.constant 0 : i32
    return %c0_i32, %0 : i32, i32
  }
  func.func @transform_5(%arg0: i32, %arg1: i32, %arg2: i32) -> (i32, i32) {
    %c0_i32 = arith.constant 0 : i32
    %c0_i32_0 = arith.constant 0 : i32
    %c0_i32_1 = arith.constant 0 : i32
    return %c0_i32, %c0_i32_0 : i32, i32
  }
  func.func @transform_6(%arg0: i32, %arg1: i32, %arg2: i32) -> (i32, i32) {
    %c0_i32 = arith.constant 0 : i32
    %c0_i32_0 = arith.constant 0 : i32
    %c0_i32_1 = arith.constant 0 : i32
    return %c0_i32, %c0_i32_0 : i32, i32
  }
  func.func @transform_7(%arg0: i32, %arg1: i32, %arg2: i32) -> (i32, i32) {
    %c0_i32 = arith.constant 0 : i32
    %c0_i32_0 = arith.constant 0 : i32
    return %arg0, %c0_i32 : i32, i32
  }
}

</mosaic_0001>

<bundles_post_ra>
// kernel: tpu_custom_call.1
= control target key start
LH: loop header
LB: loop body
LE: loop exit
PB: predicated region body
PF: predicated region fallthrough
CT: control target
= control target key end

     0   :  { %s1840_s0 = inlined_call_operand.vmem [shape: f32[2,1], index: 0, kind: input, shape index: {}]   ;;  %s1841_s1 = inlined_call_operand.hbm [shape: f32[2,1024], index: 1, kind: input, shape index: {}]   ;;  %s1842_s2 = inlined_call_operand.hbm [shape: f32[2,1024], index: 2, kind: input, shape index: {}]   ;;  %s1843_s3 = inlined_call_operand.hbm [shape: f32[1024,128], index: 3, kind: input, shape index: {}]   ;;  %s1844_s4 = inlined_call_operand.hbm [shape: f32[128,1024], index: 4, kind: input, shape index: {}]   ;;  %s1845_s5 = inlined_call_operand.vmem [shape: f32[1,128], index: 5, kind: input, shape index: {}]   ;;  %s1846_s6 = inlined_call_operand.vmem [shape: f32[1,128], index: 6, kind: input, shape index: {}]   ;;  %s1847_s7 = inlined_call_operand.vmem [shape: f32[2,1], index: 7, kind: output, shape index: {}]  }
   0x1   :  { %1859 = sst [smem:[#allocation24_spill]] %s1840_s0 }
   0x2   :  { %1860 = sst [smem:[#allocation25_spill]] %s1842_s2 }
   0x3   :  { %1861 = sst [smem:[#allocation26_spill]] %s1845_s5 }
   0x4   :  { %1862 = sst [smem:[#allocation27_spill]] %s1846_s6 }
   0x5   :  { %1863 = sst [smem:[#allocation28_spill]] %s1847_s7 }
   0x6   :  { %12 = vsyncpa [#allocation6], 0 }
   0x7   :  { %14 = vsyncpa [#allocation6 + $0x1], 0 }
   0x8   :  { %15 = vsyncpa [#allocation8], 0 }
   0x9   :  { %17 = vsyncpa [#allocation8 + $0x1], 0 }
   0xa   :  { %18 = vsyncpa [#allocation11], 0 }
   0xb   :  { %20 = vsyncpa [#allocation11 + $0x1], 0  ;;  %s1461_s24 = smov 0   ;;  %s1463_s25 = smov 0  }
   0xc   :  { %s1465_s26 = smov 0   ;;  %s1467_s27 = smov 0  }
   0xd   :  { %s1469_s28 = smov 0   ;;  %s1471_s29 = smov 0  }
   0xe   :  { %s1473_s30 = smov 0   ;;  %s1475_s8 = smov 0  }
   0xf   :  { %s1477_s9 = smov 0   ;;  %s1479_s10 = smov 0  }
  0x10   :  { %s1481_s11 = smov 0  }
  0x11 LB: > { %1864 = sst [smem:[#allocation15_spill]] %s1384_s29  ;;  %s1848_s12 = sadd.s32 4294967295, %s1404_s11   ;;  %s1404_s11 = sphi %s1481_s11, %s26_s11   ;;  %s1400_s10 = sphi %s1479_s10, %s1904_s10   ;;  %s1396_s9 = sphi %s1477_s9, %s1911_s9   ;;  %s1392_s8 = sphi %s1475_s8, %s1902_s8   ;;  %s1388_s30 = sphi %s1473_s30, %s1901_s30   ;;  %s1384_s29 = sphi %s1471_s29, %s1910_s29   ;;  %s1380_s28 = sphi %s1469_s28, %s1909_s28   ;;  %s1376_s27 = sphi %s1467_s27, %s1908_s27   ;;  %s1372_s26 = sphi %s1465_s26, %s1907_s26   ;;  %s1368_s25 = sphi %s1463_s25, %s1906_s25   ;;  %s1364_s24 = sphi %s1461_s24, %s1905_s24  }
  0x12   : > { %1865 = sst [smem:[#allocation16_spill]] %s1388_s30  ;;  %s38_s13 = sadd.s32 1, %s1396_s9 }
  0x13   : > { %1866 = sst [smem:[#allocation17_spill]] %s1392_s8  ;;  %p39_p0 = scmp.ge.s32.totalorder %s38_s13, 4 }
  0x14   : > { %1867 = sst [smem:[#allocation18_spill]] %s1396_s9  ;;  %s41_s14 = sadd.s32 1, %s1400_s10 }
  0x15   : > { %1868 = sst [smem:[#allocation19_spill]] %s1400_s10  ;;  %s75_s15 = ssub.s32 1, %s1400_s10 }
  0x16   : > { %s77_s16 = smul.u32 3, %s1400_s10  ;;  %s1913_s13 = smov (%p39_p0, %s38_s13), 0 }
  0x17   : > { %1869 = sst [smem:[#allocation20_spill]] %s1913_s13  ;;  %s1915_s14 = smov (!%p39_p0, %s41_s14), %s1400_s10 }
  0x18   : > { %s76_s17 = smul.u32 %s1396_s9, %s75_s15  ;;  %s88_s18 = sadd.s32 1, %s1384_s29 }
  0x19   : > { %p43_p1 = scmp.ge.s32.totalorder %s1915_s14, 2  ;;  %p95_p2 = scmp.ne.s32.totalorder %s1384_s29, %s1380_s28 }
  0x1a   : > { %s1528_s19 = sadd.s32 %s77_s16, %s76_s17  ;;  %p96_p3 = scmp.eq.s32.totalorder %s1404_s11, 0 }
  0x1b   : > { %s1917_s14 = smov (%p43_p1, %s1915_s14), 0  ;;  %p101_p5 = scmp.ne.s32.totalorder %s1380_s28, %s1376_s27 }
  0x1c   : > { %1870 = sst [smem:[#allocation21_spill]] %s1917_s14  ;;  %p1535_p4 = por %p96_p3, %p95_p2 }
  0x1d   : > { %s79_s21 = ssub.s32 1, %s1917_s14  ;;  %s81_s22 = smul.u32 3, %s1917_s14 }
  0x1e   : > { %s80_s23 = smul.u32 %s79_s21, %s1913_s13  ;;  %p1546_p6 = scmp.eq.s32.totalorder %s1848_s12, 0 }
  0x1f   : > { %s1552_s16 = smul.u32 %s1396_s9, %s1400_s10  ;;  %s186_s17 = sadd.s32 1, %s1372_s26 }
  0x20   : > { %s82_s7 = sadd.s32 %s81_s22, %s80_s23  ;;  %p1557_p7 = por %p1546_p6, %p101_p5 }
  0x21   : > { %s84_s21 = ssub.s32 %s1528_s19, %s82_s7  ;;  %s182_s12 = smul.u32 %s1917_s14, %s1913_s13 }
  0x22   : > { %s1873_s27 = scalar_select %p1557_p7, 1, 0 }
  0x23   : > { %p86_p8 = scmp.eq.s32.totalorder %s84_s21, 0  ;;  %p193_p9 = scmp.ne.s32.totalorder %s1372_s26, %s1368_s25 }
  0x24   : > { %s183_s10 = ssub.s32 %s1552_s16, %s182_s12  ;;  %p199_p10 = scmp.ne.s32.totalorder %s1368_s25, %s1364_s24 }
  0x25   : > { %s1570_s9 = scalar_select %p86_p8, %s1384_s29, %s88_s18  }
  0x26   : > { %p184_p11 = scmp.eq.s32.totalorder %s183_s10, 0  ;;  %p1574_p12 = por %p193_p9, %p96_p3 }
  0x27   : > { %1874 = sst [smem:[#allocation22_spill]] %s1570_s9  ;;  %p1580_p13 = por %p199_p10, %p1546_p6 }
  0x28   : > { %s1585_s7 = scalar_select %p184_p11, %s1372_s26, %s186_s17  }
  0x29   : > { %s1876_s23 = scalar_select %p1580_p13, 1, 0 }
  0x2a   : > { %1877 = sst [smem:[#allocation23_spill]] %s1585_s7  ;;  %p1856_p0 = scmp.lt.s32.totalorder %s1404_s11, 8 }
  0x2b   : > { %s1589_s21 = sand.u32 1, %s1384_s29   ;;  %s1855_s10 = sshll.u32 %s1528_s19, 6 }
  0x2c   : > { %s1854_s24 = sshll.u32 %s1589_s21, 2  ;;  %p1597_p1 = pnand %p1856_p0, %p1535_p4 }
  0x2d   : > { %s329_s18 = sand.u32 1, %s1404_s11   ;;  %s1879_s2 = sld [smem:[#allocation25_spill]] }
  0x2e   : > { %s333_s13 = scalar_lea.vmem [#allocation7], %s1854_s24  ;;  %s1009_s29 = sshll.u32 %s1589_s21, 8 }
  0x2f   : > { %s347_s9 = sshll.u32 %s333_s13, 4  ;;  %s1612_s20 = scalar_lea.sflag [#allocation8], %s329_s18  ;;  %s348_s9 = int_to_ptr.vmem [resolvable:$true] %s347_s9 }
  0x30   : > { %p1618_p3 = pneg %p1597_p1 }
  0x33   : > { %s1607_s14 = scalar_lea.hbm %s1879_s2, %s1855_s10  ;;  %s1199_s24 = scalar_lea.hbm %s1879_s2, 256 }
  0x34   : > { %s1194_s7 = scalar_lea.hbm %s1607_s14, 64 }
  0x35   : > { %p1195_p2 = scmp.ne.s32.totalorder %s1607_s14, %s1194_s7  ;;  %p1201_p6 = scmp.lt.s32.totalorder %s1199_s24, %s1194_s7 }
  0x37   : > { %p1197_p4 = pnand %p1618_p3, %p1195_p2 }
  0x39   : > { %p1198_p5 = pneg %p1197_p4 }
  0x3b   : > { %p1203_p8 = pnand %p1201_p6, %p1198_p5 }
  0x3d   : > { %1206 = shalt.err (!%p1203_p8)
}
  0x3e   : > { %s1207_s13 = scalar_lea.vmem %s348_s9, 64  ;;  %s1406_s18 = smov [#allocation7]  }
  0x3f   : > { %p1208_p9 = scmp.ne.s32.totalorder %s348_s9, %s1207_s13  ;;  %s1212_s10 = sshll.u32 %s1406_s18, 4  ;;  %s1213_s10 = int_to_ptr.vmem [resolvable:$false] %s1212_s10 }
  0x40   : > { %s1214_s5 = scalar_lea.vmem %s1213_s10, 128  ;;  %p1215_p0 = scmp.lt.s32.totalorder %s348_s9, %s1213_s10 }
  0x41   : > { %p1210_p10 = pnand %p1208_p9, %p1618_p3  ;;  %p1216_p2 = scmp.lt.s32.totalorder %s1214_s5, %s1207_s13 }
  0x43   : > { %p1211_p11 = pneg %p1210_p10  ;;  %p1217_p4 = por %p1216_p2, %p1215_p0 }
  0x45   : > { %p1218_p13 = pnand %p1217_p4, %p1211_p11 }
  0x47   : > { %1221 = shalt.err (!%p1218_p13)
}
  0x48   : > { %1084 = dma.hbm_to_vmem [thread:$0]  (!%p1597_p1), %s1607_s14, 64, %s348_s9, %s1612_s20  }
  0x49   : > { %s1033_s7 = sshll.u32 %s1528_s19, 12  ;;  %s358_s24 = scalar_lea.vmem [#allocation9], %s1009_s29 }
  0x4a   : > { %s369_s5 = sshll.u32 %s358_s24, 4  ;;  %s1637_s17 = scalar_lea.hbm %s1843_s3, %s1033_s7  ;;  %s1639_s5 = int_to_ptr.vmem [resolvable:$true] %s369_s5 }
  0x4b   : > { %p1881_p13 = scmp.lt.s32.totalorder %s1404_s11, 8  ;;  %p1015_p5 = scmp.ge.s32.totalorder %s1404_s11, 1 }
  0x4c   : > { %p399_p6 = scmp.lt.s32.totalorder %s1404_s11, 9  ;;  %s1884_s29 = sshll.u32 %s1528_s19, 6 }
  0x4d   : > { %p1645_p0 = pnand %p1881_p13, %p1574_p12  ;;  %s320_s7 = scalar_lea.hbm %s1841_s1, %s1884_s29 }
  0x4e   : > { %p1651_p8 = pnand %p1015_p5, %p399_p6  ;;  %s1885_s24 = sshll.u32 %s1589_s21, 2 }
  0x4f   : > { %s308_s10 = scalar_lea.vmem [#allocation5], %s1885_s24  ;;  %s305_s22 = scalar_lea.sflag [#allocation6], %s1589_s21 }
  0x50   : > { %s322_s15 = sshll.u32 %s308_s10, 4  ;;  %s1222_s2 = scalar_lea.hbm %s320_s7, 64  ;;  %s323_s15 = int_to_ptr.vmem [resolvable:$true] %s322_s15 }
  0x51   : > { %p1223_p12 = scmp.ne.s32.totalorder %s320_s7, %s1222_s2  ;;  %s1227_s8 = scalar_lea.hbm %s1841_s1, 256 }
  0x52   : > { %p1229_p11 = scmp.lt.s32.totalorder %s1227_s8, %s1222_s2 }
  0x53   : > { %p1225_p9 = pnand %p1223_p12, %p1618_p3 }
  0x55   : > { %p1226_p10 = pneg %p1225_p9 }
  0x57   : > { %p1231_p2 = pnand %p1229_p11, %p1226_p10 }
  0x59   : > { %1234 = shalt.err (!%p1231_p2)
}
  0x5a   : > { %s1235_s19 = scalar_lea.vmem %s323_s15, 64  ;;  %s1407_s29 = smov [#allocation5]  }
  0x5b   : > { %p1236_p4 = scmp.ne.s32.totalorder %s323_s15, %s1235_s19  ;;  %s1240_s21 = sshll.u32 %s1407_s29, 4  ;;  %s1241_s21 = int_to_ptr.vmem [resolvable:$false] %s1240_s21 }
  0x5c   : > { %s1242_s14 = scalar_lea.vmem %s1241_s21, 128  ;;  %p1243_p6 = scmp.lt.s32.totalorder %s323_s15, %s1241_s21 }
  0x5d   : > { %p1238_p13 = pnand %p1236_p4, %p1618_p3  ;;  %p1244_p12 = scmp.lt.s32.totalorder %s1242_s14, %s1235_s19 }
  0x5f   : > { %p1239_p5 = pneg %p1238_p13  ;;  %p1245_p9 = por %p1244_p12, %p1243_p6 }
  0x61   : > { %p1246_p7 = pnand %p1245_p9, %p1239_p5 }
  0x63   : > { %1249 = shalt.err (!%p1246_p7)
}
  0x64   : > { %1081 = dma.hbm_to_vmem [thread:$0]  (!%p1597_p1), %s320_s7, 64, %s323_s15, %s305_s22  }
  0x65   : > { %s1250_s0 = scalar_lea.hbm %s1637_s17, 4096  ;;  %s1255_s8 = scalar_lea.hbm %s1843_s3, 16384 }
  0x66   : > { %p1251_p10 = scmp.ne.s32.totalorder %s1637_s17, %s1250_s0  ;;  %p1257_p4 = scmp.lt.s32.totalorder %s1255_s8, %s1250_s0 }
  0x68   : > { %p1253_p11 = pnand %p1251_p10, %p1618_p3 }
  0x6a   : > { %p1254_p2 = pneg %p1253_p11 }
  0x6c   : > { %p1259_p13 = pnand %p1257_p4, %p1254_p2 }
  0x6e   : > { %1262 = shalt.err (!%p1259_p13)
}
  0x6f   : > { %s1263_s18 = scalar_lea.vmem %s1639_s5, 4096  ;;  %s1408_s7 = smov [#allocation9]  }
  0x70   : > { %p1264_p7 = scmp.ne.s32.totalorder %s1639_s5, %s1263_s18  ;;  %s1268_s24 = sshll.u32 %s1408_s7, 4  ;;  %s1269_s24 = int_to_ptr.vmem [resolvable:$false] %s1268_s24 }
  0x71   : > { %s1270_s10 = scalar_lea.vmem %s1269_s24, 8192  ;;  %p1271_p12 = scmp.lt.s32.totalorder %s1639_s5, %s1269_s24 }
  0x72   : > { %p1266_p5 = pnand %p1264_p7, %p1618_p3  ;;  %p1272_p9 = scmp.lt.s32.totalorder %s1270_s10, %s1263_s18 }
  0x74   : > { %p1267_p6 = pneg %p1266_p5  ;;  %p1273_p10 = por %p1272_p9, %p1271_p12 }
  0x76   : > { %p1274_p11 = pnand %p1273_p10, %p1267_p6 }
  0x78   : > { %1277 = shalt.err (!%p1274_p11)
}
  0x79   : > { %s1409_s15 = smov 128   ;;  %s1410_s6 = smov 8  }
  0x7a   : > { %1087 = dma.hbm_to_vmem [thread:$0]  (!%p1597_p1), %s1637_s17, 4096, %s1639_s5, %s1612_s20, %s1409_s15, %s1409_s15, %s1410_s6  }
  0x7b   : > { %s379_s22 = sand.u32 1, %s1372_s26   ;;  %s1034_s19 = sshll.u32 %s1552_s16, 8 }
  0x7c   : > { %s1012_s29 = sshll.u32 %s379_s22, 8  ;;  %s390_s0 = scalar_lea.hbm %s1844_s4, %s1034_s19 }
  0x7d   : > { %s383_s2 = scalar_lea.vmem [#allocation10], %s1012_s29  ;;  %s380_s8 = scalar_lea.sflag [#allocation11], %s379_s22 }
  0x7e   : > { %s391_s30 = sshll.u32 %s383_s2, 4  ;;  %p1280_p3 = pneg %p1645_p0  ;;  %s392_s30 = int_to_ptr.vmem [resolvable:$true] %s391_s30 }
  0x7f   : > { %s1291_s18 = scalar_lea.vmem %s392_s30, 4096  ;;  %s1411_s7 = smov [#allocation10]  }
  0x80   : > { %p1292_p2 = scmp.ne.s32.totalorder %s392_s30, %s1291_s18  ;;  %s1296_s12 = sshll.u32 %s1411_s7, 4  ;;  %s1297_s12 = int_to_ptr.vmem [resolvable:$false] %s1296_s12 }
  0x81   : > { %s1298_s20 = scalar_lea.vmem %s1297_s12, 8192  ;;  %p1299_p1 = scmp.lt.s32.totalorder %s392_s30, %s1297_s12 }
  0x82   : > { %p1294_p4 = pnand %p1292_p2, %p1280_p3  ;;  %p1300_p7 = scmp.lt.s32.totalorder %s1298_s20, %s1291_s18 }
  0x84   : > { %p1295_p13 = pneg %p1294_p4  ;;  %p1301_p5 = por %p1300_p7, %p1299_p1 }
  0x86   : > { %p1302_p6 = pnand %p1301_p5, %p1295_p13 }
  0x88   : > { %1305 = shalt.err (!%p1302_p6)
}
  0x89   : > { %s1412_s16 = smov 1024   ;;  %s1413_s5 = smov 256  }
  0x8a   : > { %s1414_s17 = smov 16   ;;  %403 = sbr.rel (%p1651_p8) target bundleno = 959 (0x3bf), region = 48 }
  0x8b   : > { %1090 = dma.hbm_to_vmem [thread:$0]  (!%p1645_p0), %s390_s0, 4096, %s392_s30, %s380_s8, %s1412_s16, %s1413_s5, %s1414_s17  }
  0x8c   : > { %s405_s24 = sand.u32 (!%p1651_p8), 1, %s1380_s28   ;;  %p1886_p12 = scmp.ne.s32.totalorder (!%p1651_p8), %s1873_s27, 0 }
  0x8d   : > { %s1016_s10 = sshll.u32 (!%p1651_p8), %s405_s24, 2  ;;  %s406_s15 = scalar_lea.sflag (!%p1651_p8), [#allocation6], %s405_s24 }
  0x8e   : > { %s1701_s6 = scalar_lea.vmem (!%p1651_p8), [#allocation5], %s1016_s10 }
  0x8f   : > { %1351 = dma.done.wait (%p1886_p12), %s406_s15, 64  }
  0x90   : > { %1353 = vsyncadd (%p1886_p12), %s406_s15, 4294967232  ;;  %s1887_s22 = sadd.s32 4294967295, %s1404_s11   ;;  %s1709_s29 = scalar_lea.vmem [#allocation7], %s1016_s10 }
  0x91   : > { %s414_s13 = sand.u32 1, %s1887_s22  }
  0x92   : > { %s415_s19 = scalar_lea.sflag [#allocation8], %s414_s13 }
  0x93   : > { %1355 = dma.done.wait (%p1886_p12), %s415_s19, 4160  }
  0x94   : > { %1357 = vsyncadd (%p1886_p12), %s415_s19, 4294963136  ;;  %s1018_s9 = sshll.u32 %s405_s24, 8  ;;  %s432_s21 = sand.u32 1, %s1368_s25  }
  0x95   : > { %s1019_s14 = sshll.u32 %s432_s21, 8  ;;  %s1716_s0 = scalar_lea.vmem [#allocation9], %s1018_s9 }
  0x96   : > { %s433_s2 = scalar_lea.sflag [#allocation11], %s432_s21  ;;  %s1718_s30 = scalar_lea.vmem [#allocation10], %s1019_s14 }
  0x97   : > { %p1888_p0 = scmp.ne.s32.totalorder %s1876_s23, 0 }
  0x99   : > { %1359 = dma.done.wait (%p1888_p0), %s433_s2, 4096  }
  0x9a   : > { %1361 = vsyncadd (%p1888_p0), %s433_s2, 4294963200  ;;  %s1889_s8 = sld [smem:[#allocation17_spill]] }
  0xa0   : > { %p1020_p8 = scmp.ne.s32.totalorder %s1889_s8, 0 }
  0xa1   : > { %s1890_s27 = sld [smem:[#allocation16_spill]] (!%p1020_p8) }
  0xa2   : > { %513 = sbr.rel (%p1020_p8) target bundleno = 520 (0x208), region = 68 }
  0xa7   : > { %p1021_p9 = scmp.ne.s32.totalorder %s1890_s27, 0 }
  0xa9   : > { %517 = sbr.rel (%p1021_p9) target bundleno = 176 (0xb0), region = 72 }
  0xae   : > { %v1415_v0 = vmov 0.0  }
  0xaf   : > { %518 = vst [vmem:[#allocation2] sm:$0x3] %v1415_v0 }
  0xb0 PF: > { %s1891_s12 = sld [smem:[#allocation24_spill]]  ;;  %v585_v2 = vld [vmem:[%s1716_s0 + $0xf8] sm:$0xff]  ;;  %v1416_v4 = vmov 0   ;;  %v584_v5 = vld [vmem:[%s1716_s0 + $0xf0] sm:$0xff]  ;;  %v583_v7 = vld [vmem:[%s1716_s0 + $0xe8] sm:$0xff]  ;;  %v532_v37 = vlaneseq }
  0xb1   : > { %v569_v3 = vld [vmem:[%s1716_s0 + $0x78] sm:$0xff]  ;;  %1191 = vset.pattern.permute.xlu0 %v1416_v4  ;;  %1035 = vmatprep.subr.mxu0 %v585_v2  ;;  %v568_v6 = vld [vmem:[%s1716_s0 + $0x70] sm:$0xff]  ;;  %v567_v8 = vld [vmem:[%s1716_s0 + $0x68] sm:$0xff]  ;;  %v1417_v35 = vmov 1983009808  }
  0xb2   : > { %1036 = vmatpush3.msra.mxu0 %v569_v3  ;;  %v582_v9 = vld [vmem:[%s1716_s0 + $0xe0] sm:$0xff]  ;;  %v581_v11 = vld [vmem:[%s1716_s0 + $0xd8] sm:$0xff]  ;;  %v580_v13 = vld [vmem:[%s1716_s0 + $0xd0] sm:$0xff]  ;;  %v530_v36 = vunpack.c.l.s4 %v1417_v35  ;;  %v533_v39 = vshrl.u32 %v532_v37, 7 }
  0xb3   : > { %1037 = vmatprep.subr.mxu0 %v584_v5  ;;  %v566_v10 = vld [vmem:[%s1716_s0 + $0x60] sm:$0xff]  ;;  %v565_v12 = vld [vmem:[%s1716_s0 + $0x58] sm:$0xff]  ;;  %v564_v14 = vld [vmem:[%s1716_s0 + $0x50] sm:$0xff] }
  0xb4   : > { %1038 = vmatpush3.msra.mxu0 %v568_v6  ;;  %v579_v15 = vld [vmem:[%s1716_s0 + $0xc8] sm:$0xff]  ;;  %v578_v17 = vld [vmem:[%s1716_s0 + $0xc0] sm:$0xff]  ;;  %v577_v19 = vld [vmem:[%s1716_s0 + $0xb8] sm:$0xff]  ;;  %v531_v38 = vunpack.c.0.s8 %v530_v36 }
  0xb5   : > { %1039 = vmatprep.subr.mxu0 %v583_v7  ;;  %v563_v16 = vld [vmem:[%s1716_s0 + $0x48] sm:$0xff]  ;;  %v562_v18 = vld [vmem:[%s1716_s0 + $0x40] sm:$0xff]  ;;  %v561_v20 = vld [vmem:[%s1716_s0 + $0x38] sm:$0xff] }
  0xb6   : > { %v521_v1 = vld [vmem:[%s1891_s12] sm:$0x3]  ;;  %1040 = vmatpush3.msra.mxu0 %v567_v8  ;;  %v576_v21 = vld [vmem:[%s1716_s0 + $0xb0] sm:$0xff]  ;;  %v574_v25 = vld [vmem:[%s1716_s0 + $0xa0] sm:$0xff]  ;;  %v534_v42 = vsub.s32 %v531_v38, %v533_v39 }
  0xb7   : > { %525 = vperm.xlu0 %1191, %v521_v1   ;;  %1041 = vmatprep.subr.mxu0 %v582_v9  ;;  %v560_v22 = vld [vmem:[%s1716_s0 + $0x30] sm:$0xff]  ;;  %v575_v23 = vld [vmem:[%s1716_s0 + $0xa8] sm:$0xff]  ;;  %v558_v26 = vld [vmem:[%s1716_s0 + $0x20] sm:$0xff] }
  0xb8   : > { %1042 = vmatpush3.msra.mxu0 %v566_v10  ;;  %v559_v24 = vld [vmem:[%s1716_s0 + $0x28] sm:$0xff]  ;;  %v573_v27 = vld [vmem:[%s1716_s0 + $0x98] sm:$0xff]  ;;  %v572_v29 = vld [vmem:[%s1716_s0 + $0x90] sm:$0xff] }
  0xb9   : > { %1043 = vmatprep.subr.mxu0 %v581_v11  ;;  %v557_v28 = vld [vmem:[%s1716_s0 + $0x18] sm:$0xff]  ;;  %v556_v30 = vld [vmem:[%s1716_s0 + $0x10] sm:$0xff]  ;;  %v571_v31 = vld [vmem:[%s1716_s0 + $0x88] sm:$0xff] }
  0xba   : > { %1044 = vmatpush3.msra.mxu0 %v565_v12  ;;  %v555_v32 = vld [vmem:[%s1716_s0 + $0x8] sm:$0xff]  ;;  %v570_v33 = vld [vmem:[%s1716_s0 + $0x80] sm:$0xff]  ;;  %v519_v40 = vld [vmem:[%s1701_s6] sm:$0xf] }
  0xbb   : > { %1045 = vmatprep.subr.mxu0 %v580_v13  ;;  %v554_v34 = vld [vmem:[%s1716_s0] sm:$0xff]  ;;  %v520_v41 = vld [vmem:[%s1709_s29] sm:$0xf]  ;;  %v553_v55 = vld [vmem:[#allocation2] sm:$0x3] }
  0xbc   : > { %1046 = vmatpush3.msra.mxu0 %v564_v14  ;;  %v522_v43 = vsub.f32 %v519_v40, %v520_v41 }
  0xbd   : > { %1047 = vmatprep.subr.mxu0 %v579_v15 }
  0xbe   : > { %1048 = vmatpush3.msra.mxu0 %v563_v16  ;;  %v535_v44 = vrot.slane %v522_v43, %v534_v42 }
  0xbf   : > { %1049 = vmatprep.subr.mxu0 %v578_v17 }
  0xc0   : > { %1050 = vmatpush3.msra.mxu0 %v562_v18  ;;  %v536_v45 = vcombine.high %v535_v44, %v535_v44 }
  0xc1   : > { %1051 = vmatprep.subr.mxu0 %v577_v19 }
  0xc2   : > { %1052 = vmatpush3.msra.mxu0 %v561_v20 }
  0xc3   : > { %1053 = vmatprep.subr.mxu0 %v576_v21 }
  0xc4   : > { %1054 = vmatpush3.msra.mxu0 %v560_v22 }
  0xc5   : > { %1055 = vmatprep.subr.mxu0 %v575_v23 }
  0xc6   : > { %1056 = vmatpush3.msra.mxu0 %v559_v24 }
  0xc7   : > { %1057 = vmatprep.subr.mxu0 %v574_v25 }
  0xc8   : > { %1058 = vmatpush3.msra.mxu0 %v558_v26 }
  0xc9   : > { %1059 = vmatprep.subr.mxu0 %v573_v27 }
  0xca   : > { %1060 = vmatpush3.msra.mxu0 %v557_v28 }
  0xcb   : > { %1061 = vmatprep.subr.mxu0 %v572_v29 }
  0xcc   : > { %1062 = vmatpush3.msra.mxu0 %v556_v30 }
  0xcd   : > { %1063 = vmatprep.subr.mxu0 %v571_v31 }
  0xce   : > { %1064 = vmatpush3.msra.mxu0 %v555_v32 }
  0xcf   : > { %1065 = vmatprep.subr.mxu0 %v570_v33 }
  0xd0   : > { %1066 = vmatpush3.msra.mxu0 %v554_v34 }
 0x132   : > { %v526_v46 = vpop.permute.xlu0 %525 }
 0x133   : > { %v539_v47 = vmul.f32 %v535_v44, %v526_v46  ;;  %v540_v48 = vmul.f32 %v536_v45, %v526_v46 }
 0x135   : > { %v543_v49 = vcombine.low %v539_v47, %v540_v48 }
 0x137   : > { %v550_v50 = vrot.slane %v543_v49, %v534_v42 }
 0x139   : > { %v552_v51 = vadd.f32 %v550_v50, %v520_v41 }
 0x13b   : > { %v593_v52 = vrot.slane %v552_v51, %v534_v42 }
 0x13d   : > { %v594_v53 = vcombine.high %v593_v52, %v593_v52 }
 0x13f   : > { %661 = vmatprep.mubr.f32.mxu0 %v594_v53 }
 0x140   : > { %662 = vmatmul.mubr.f32.vlgmr.msra.gmra.mxu0 %v593_v52 }
 0x200   : > { %v1067_v54 = vpop.f32.mrf.mxu0 }
 0x202   : > { %v1068_v56 = vpop.f32.mrf.mxu0 }
 0x203   : > { %v1069_v57 = vadd.f32 %v1068_v56, %v1067_v54 }
 0x205   : > { %v667_v58 = vadd.f32 %v1069_v57, %v553_v55 }
 0x207   : > { %668 = vst [vmem:[#allocation2] sm:$0x3] %v667_v58 }
 0x208 PF: > { %s1892_s23 = sld [smem:[#allocation17_spill]] }
 0x20e   : > { %p1022_p10 = scmp.ne.s32.totalorder %s1892_s23, 1 }
 0x20f   : > { %s1893_s20 = sld [smem:[#allocation16_spill]] (!%p1022_p10) }
 0x210   : > { %672 = sbr.rel (%p1022_p10) target bundleno = 959 (0x3bf), region = 76 }
 0x215   : > { %p1023_p11 = scmp.ne.s32.totalorder %s1893_s20, 0 }
 0x216   : > { %s1894_s17 = sld [smem:[#allocation26_spill]] (!%p1023_p11) }
 0x217   : > { %676 = sbr.rel (%p1023_p11) target bundleno = 549 (0x225), region = 80  ;;  %s1895_s15 = sld [smem:[#allocation27_spill]] (!%p1023_p11) }
 0x21c   : > { %v678_v59 = vld [vmem:[#allocation2] sm:$0x3]  ;;  %v1418_v61 = vmov 0.0   ;;  %v1419_v0 = vmov 0.2  }
 0x21d   : > { %v1024_v60 = vld [vmem:[%s1894_s17] ss:$0 sm:$0xff]  ;;  %677 = vst [vmem:[#allocation4] sm:$0x3] %v1418_v61 }
 0x21e   : > { %v686_v62 = vadd.f32 %v1024_v60, %v678_v59  ;;  %v1025_v63 = vld [vmem:[%s1895_s15] ss:$0 sm:$0xff] }
 0x220   : > { %vm687_vm0 = vcmp.gt.f32.partialorder %v686_v62, 0.0 }
 0x221   : > { %v688_v1 = vsel %vm687_vm0, 1.0, %v1419_v0 }
 0x222   : > { %v696_v2 = vmul.f32 %v1025_v63, %v688_v1 }
 0x224   : > { %697 = vst [vmem:[#allocation3] sm:$0x3] %v696_v2 }
 0x225 PF: > { %v730_v3 = vld [vmem:[%s1718_s30 + $0xf8] sm:$0xff]  ;;  %v729_v4 = vld [vmem:[%s1718_s30 + $0xf0] sm:$0xff]  ;;  %v728_v5 = vld [vmem:[%s1718_s30 + $0xe8] sm:$0xff]  ;;  %v1420_v7 = vmov 0.0   ;;  %s1896_s6 = sld [smem:[#allocation16_spill]] }
 0x226   : > { %731 = vmatprep.subr.mxu0 %v730_v3  ;;  %v727_v6 = vld [vmem:[%s1718_s30 + $0xe0] sm:$0xff]  ;;  %795 = vmatprep.mubr.f32.mxu0 %v1420_v7  ;;  %v726_v8 = vld [vmem:[%s1718_s30 + $0xd8] sm:$0xff]  ;;  %v725_v9 = vld [vmem:[%s1718_s30 + $0xd0] sm:$0xff] }
 0x227   : > { %732 = vmatpush1.msra.mxu0 %v729_v4  ;;  %v724_v10 = vld [vmem:[%s1718_s30 + $0xc8] sm:$0xff]  ;;  %v723_v11 = vld [vmem:[%s1718_s30 + $0xc0] sm:$0xff]  ;;  %v722_v12 = vld [vmem:[%s1718_s30 + $0xb8] sm:$0xff] }
 0x228   : > { %733 = vmatprep.subr.mxu0 %v728_v5  ;;  %v721_v13 = vld [vmem:[%s1718_s30 + $0xb0] sm:$0xff]  ;;  %v720_v14 = vld [vmem:[%s1718_s30 + $0xa8] sm:$0xff]  ;;  %v719_v15 = vld [vmem:[%s1718_s30 + $0xa0] sm:$0xff] }
 0x229   : > { %734 = vmatpush1.msra.mxu0 %v727_v6  ;;  %v718_v16 = vld [vmem:[%s1718_s30 + $0x98] sm:$0xff]  ;;  %v717_v17 = vld [vmem:[%s1718_s30 + $0x90] sm:$0xff]  ;;  %v716_v18 = vld [vmem:[%s1718_s30 + $0x88] sm:$0xff] }
 0x22a   : > { %735 = vmatprep.subr.mxu0 %v726_v8  ;;  %v715_v19 = vld [vmem:[%s1718_s30 + $0x80] sm:$0xff]  ;;  %v714_v20 = vld [vmem:[%s1718_s30 + $0x78] sm:$0xff]  ;;  %v713_v21 = vld [vmem:[%s1718_s30 + $0x70] sm:$0xff] }
 0x22b   : > { %736 = vmatpush1.msra.mxu0 %v725_v9  ;;  %v712_v22 = vld [vmem:[%s1718_s30 + $0x68] sm:$0xff]  ;;  %v711_v23 = vld [vmem:[%s1718_s30 + $0x60] sm:$0xff]  ;;  %v710_v24 = vld [vmem:[%s1718_s30 + $0x58] sm:$0xff]  ;;  %p1026_p3 = scmp.ne.s32.totalorder %s1896_s6, 3 }
 0x22c   : > { %737 = vmatprep.subr.mxu0 %v724_v10  ;;  %v709_v25 = vld [vmem:[%s1718_s30 + $0x50] sm:$0xff]  ;;  %v708_v26 = vld [vmem:[%s1718_s30 + $0x48] sm:$0xff]  ;;  %v707_v27 = vld [vmem:[%s1718_s30 + $0x40] sm:$0xff]  ;;  %s1897_s19 = sld [smem:[#allocation28_spill]] (!%p1026_p3) }
 0x22d   : > { %738 = vmatpush1.msra.mxu0 %v723_v11  ;;  %v706_v28 = vld [vmem:[%s1718_s30 + $0x38] sm:$0xff]  ;;  %v705_v29 = vld [vmem:[%s1718_s30 + $0x30] sm:$0xff]  ;;  %v704_v30 = vld [vmem:[%s1718_s30 + $0x28] sm:$0xff] }
 0x22e   : > { %739 = vmatprep.subr.mxu0 %v722_v12  ;;  %v703_v31 = vld [vmem:[%s1718_s30 + $0x20] sm:$0xff]  ;;  %v702_v32 = vld [vmem:[%s1718_s30 + $0x18] sm:$0xff]  ;;  %v701_v33 = vld [vmem:[%s1718_s30 + $0x10] sm:$0xff] }
 0x22f   : > { %740 = vmatpush1.msra.mxu0 %v721_v13  ;;  %v700_v34 = vld [vmem:[%s1718_s30 + $0x8] sm:$0xff]  ;;  %v699_v35 = vld [vmem:[%s1718_s30] sm:$0xff] }
 0x230   : > { %741 = vmatprep.subr.mxu0 %v720_v14  ;;  %v698_v36 = vld [vmem:[#allocation3] sm:$0x3]  ;;  %v804_v38 = vld [vmem:[#allocation4] sm:$0x3] }
 0x231   : > { %742 = vmatpush1.msra.mxu0 %v719_v15 }
 0x232   : > { %743 = vmatprep.subr.mxu0 %v718_v16 }
 0x233   : > { %744 = vmatpush1.msra.mxu0 %v717_v17 }
 0x234   : > { %745 = vmatprep.subr.mxu0 %v716_v18 }
 0x235   : > { %746 = vmatpush1.msra.mxu0 %v715_v19 }
 0x236   : > { %747 = vmatprep.subr.mxu0 %v714_v20 }
 0x237   : > { %748 = vmatpush1.msra.mxu0 %v713_v21 }
 0x238   : > { %749 = vmatprep.subr.mxu0 %v712_v22 }
 0x239   : > { %750 = vmatpush1.msra.mxu0 %v711_v23 }
 0x23a   : > { %751 = vmatprep.subr.mxu0 %v710_v24 }
 0x23b   : > { %752 = vmatpush1.msra.mxu0 %v709_v25 }
 0x23c   : > { %753 = vmatprep.subr.mxu0 %v708_v26 }
 0x23d   : > { %754 = vmatpush1.msra.mxu0 %v707_v27 }
 0x23e   : > { %755 = vmatprep.subr.mxu0 %v706_v28 }
 0x23f   : > { %756 = vmatpush1.msra.mxu0 %v705_v29 }
 0x240   : > { %757 = vmatprep.subr.mxu0 %v704_v30 }
 0x241   : > { %758 = vmatpush1.msra.mxu0 %v703_v31 }
 0x242   : > { %759 = vmatprep.subr.mxu0 %v702_v32 }
 0x243   : > { %760 = vmatpush1.msra.mxu0 %v701_v33 }
 0x244   : > { %761 = vmatprep.subr.mxu0 %v700_v34 }
 0x245   : > { %762 = vmatpush1.msra.mxu0 %v699_v35 }
 0x246   : > { %796 = vmatmul.mubr.f32.vlgmr.msra.gmra.mxu0 %v698_v36 }
 0x306   : > { %v797_v37 = vpop.f32.mrf.mxu0 }
 0x307   : > { %v802_v39 = vmul.f32 %v797_v37, %v797_v37 }
 0x308   : > { %v799_v41 = vpop.f32.mrf.mxu0 }
 0x309   : > { %v805_v40 = vadd.f32 %v804_v38, %v802_v39  ;;  %v803_v42 = vmul.f32 %v799_v41, %v799_v41 }
 0x30b   : > { %806 = vst [vmem:[#allocation4] sm:$0x3] %v805_v40 }
 0x311   : > { %813 = sbr.rel (%p1026_p3) target bundleno = 959 (0x3bf), region = 84 }
 0x312   : > { %v807_v43 = vld [vmem:[#allocation4] sm:$0x3] }
 0x313   : > { %v808_v44 = vadd.f32 %v807_v43, %v803_v42 }
 0x315   : > { %809 = vst [vmem:[#allocation4] sm:$0x3] %v808_v44 }
 0x316   : > { %vm815_vm1 = vcmask 1041408   ;;  %vm828_vm4 = vcmask 1024  }
 0x31c   : > { %v814_v45 = vld [vmem:[#allocation4] sm:$0x3] }
 0x31d   : > { %v816_v46 = vsel %vm815_vm1, %v814_v45, 0.0 }
 0x31e   : > { %817 = vadd.xlane.f32.xlu0 %v816_v46 }
 0x3a7   : > { %v818_v47 = vpop.xlane.xlu0 %817 }
 0x3a8   : > { %1192 = vrsqrt.f32 %v818_v47  ;;  %vm821_vm2 = vcmp.eq.f32.partialorder %v818_v47, inf  ;;  %v824_v50 = vand.u32 2147483648, %v818_v47  ;;  %vm823_vm3 = vcmp.eq.f32.partialorder %v818_v47, 0.0 }
 0x3b5   : > { %v1193_v48 = vpop.eup %1192 }
 0x3b6   : > { %v820_v49 = vmul.f32 %v1193_v48, %v818_v47 }
 0x3b8   : > { %v822_v51 = vsel %vm821_vm2, %v818_v47, %v820_v49 }
 0x3b9   : > { %v825_v52 = vsel %vm823_vm3, %v824_v50, %v822_v51 }
 0x3ba   : > { %v1027_v53 = vadd.f32 -1.0, %v825_v52 }
 0x3bc   : > { %v827_v54 = vmul.f32 %v1027_v53, %v1027_v53 }
 0x3be   : > { %829 = vst.msk [vmem:[%s1897_s19] sm:$0x3] %vm828_vm4, %v827_v54 }
 0x3bf PF: > { %s26_s11 = sadd.s32 1, %s1404_s11   ;;  %s1898_s29 = sld [smem:[#allocation23_spill]] }
 0x3c0   : > { %p23_p2 = scmp.ge.s32.totalorder %s26_s11, 10   ;;  %s1899_s9 = sld [smem:[#allocation15_spill]] }
 0x3c1   : > { %s1900_s21 = sld [smem:[#allocation22_spill]]  ;;  %s1905_s24 = smov %s1368_s25 }
 0x3c2   : > { %s1901_s30 = sld [smem:[#allocation18_spill]]  ;;  %s1906_s25 = smov %s1372_s26 }
 0x3c3   : > { %s1902_s8 = sld [smem:[#allocation19_spill]]  ;;  %s1908_s27 = smov %s1380_s28 }
 0x3c4   : > { %s1903_s14 = sld [smem:[#allocation20_spill]] }
 0x3c5   : > { %s1904_s10 = sld [smem:[#allocation21_spill]]  ;;  %s1907_s26 = smov %s1898_s29 }
 0x3c6   : > { %s1909_s28 = smov %s1899_s9  ;;  %25 = sbr.rel (!%p23_p2) target bundleno = 17 (0x11), region = 148 }
 0x3c7   : > { %s1910_s29 = smov %s1900_s21 }
 0x3ca   : > { %s1911_s9 = smov %s1903_s14 }
 0x3cb   :  { %849 = vsyncpa [#allocation6], 1 }
 0x3cc   :  { %851 = vsyncpa [#allocation6 + $0x1], 1 }
 0x3cd   :  { %852 = vsyncpa [#allocation8], 1 }
 0x3ce   :  { %854 = vsyncpa [#allocation8 + $0x1], 1 }
 0x3cf   :  { %855 = vsyncpa [#allocation11], 1 }
 0x3d0   :  { %857 = vsyncpa [#allocation11 + $0x1], 1 }

</bundles_post_ra>
